<compile_context>
chip_gen: v7x
topology: tpu7x:2x2x1
jax: 0.10.0
libtpu: 0.0.40
codegen_flags: <defaults>
</compile_context>

<pallas_src>
import functools

import jax
import jax.numpy as jnp
from jax.experimental import pallas as pl
from jax.experimental.pallas import tpu as pltpu

_LANE = 128


def _round_up(x, m):
    return (x + m - 1) // m * m


def _vmem_budgets():
    """(per-step block budget, scoped vmem limit) derived from the chip."""
    try:
        cap = pltpu.get_tpu_info().vmem_capacity_bytes
    except Exception:  # conservative (v7x-sized) fallback
        cap = 64 * 1024 * 1024
    vmem_limit = (3 * cap) // 4      # 96 MiB on v5e/v6e, 48 MiB on v7x
    tile_budget = vmem_limit // 2    # 48 MiB on v5e/v6e, 24 MiB on v7x
    return tile_budget, vmem_limit


def _per_lane_bytes(rows, itemsize):
    # Double-buffered input + output blocks, plus ~2 full-height f32
    # intermediates (the f32 upcast of x and the pre-cast result).
    return 2 * rows * itemsize + 2 * rows * itemsize + 2 * rows * 4


def _pick_tile_d(rows, feat, itemsize, tile_budget):
    """Widest multiple-of-128 feature tile fitting the per-step VMEM budget."""
    d_ceil = _round_up(feat, _LANE)
    per_lane = max(_per_lane_bytes(rows, itemsize), 1)
    tile = (tile_budget // per_lane) // _LANE * _LANE
    tile = min(tile, d_ceil)
    # Megacore: keep >= 2 feature tiles so the "parallel" axis can be sharded
    # across v7x's two TensorCores (near-zero cost on single-TC v5e/v6e).
    if d_ceil >= 2 * _LANE:
        tile = min(tile, _round_up(d_ceil // 2, _LANE))
    return max(tile, _LANE)


# ---------------------------------------------------------------------------
# Single-pass kernel: full batch column resident per feature tile.
# ---------------------------------------------------------------------------
def _bn_single_pass_kernel(x_ref, gamma_ref, beta_ref, o_ref, *, eps, inv_b):
    # x block: (B, tile_d); gamma/beta blocks: (1, tile_d).
    x = x_ref[...].astype(jnp.float32)

    s = jnp.sum(x, axis=0, keepdims=True)            # (1, tile_d)
    sq = jnp.sum(x * x, axis=0, keepdims=True)       # (1, tile_d)
    mean = s * inv_b
    # Biased variance via E[x^2] - E[x]^2; clamp guards tiny negative values
    # from cancellation.
    var = jnp.maximum(sq * inv_b - mean * mean, 0.0)
    inv_std = jax.lax.rsqrt(var + eps)

    # Fold the affine into a single scale/shift: out = x*scale + shift.
    scale = gamma_ref[...].astype(jnp.float32) * inv_std
    shift = beta_ref[...].astype(jnp.float32) - mean * scale
    o_ref[...] = (x * scale + shift).astype(o_ref.dtype)


def _forward_single_pass(x, gamma2d, beta2d, eps, out_dtype, tile_budget,
                         vmem_limit):
    B, D = x.shape
    itemsize = jnp.dtype(out_dtype).itemsize
    tile_d = _pick_tile_d(B, D, itemsize, tile_budget)
    grid = (pl.cdiv(D, tile_d),)

    kernel = functools.partial(
        _bn_single_pass_kernel, eps=float(eps), inv_b=float(1.0 / B))

    return pl.pallas_call(
        kernel,
        out_shape=jax.ShapeDtypeStruct((B, D), out_dtype),
        grid=grid,
        in_specs=[
            pl.BlockSpec((B, tile_d), lambda j: (0, j)),
            pl.BlockSpec((1, tile_d), lambda j: (0, j)),
            pl.BlockSpec((1, tile_d), lambda j: (0, j)),
        ],
        out_specs=pl.BlockSpec((B, tile_d), lambda j: (0, j)),
        compiler_params=pltpu.CompilerParams(
            dimension_semantics=("parallel",),
            vmem_limit_bytes=vmem_limit,
        ),
    )(x, gamma2d, beta2d)


# ---------------------------------------------------------------------------
# Two-pass path for very large batch: (1) sum / sum-of-squares accumulation
# over a batch grid axis, (2) normalize + affine.
# ---------------------------------------------------------------------------
def _bn_stats_kernel(x_ref, sum_ref, sq_ref, *, batch, tile_b):
    i = pl.program_id(1)  # batch-block index (reduction axis, "arbitrary")

    @pl.when(i == 0)
    def _init():
        sum_ref[...] = jnp.zeros_like(sum_ref)
        sq_ref[...] = jnp.zeros_like(sq_ref)

    x = x_ref[...].astype(jnp.float32)
    # Mask rows past the true batch size (boundary batch block).
    row = jax.lax.broadcasted_iota(jnp.int32, x.shape, 0) + i * tile_b
    x = jnp.where(row < batch, x, 0.0)
    sum_ref[...] += jnp.sum(x, axis=0, keepdims=True)
    sq_ref[...] += jnp.sum(x * x, axis=0, keepdims=True)


def _bn_apply_kernel(x_ref, scale_ref, shift_ref, o_ref):
    x = x_ref[...].astype(jnp.float32)
    o_ref[...] = (x * scale_ref[...] + shift_ref[...]).astype(o_ref.dtype)


def _forward_two_pass(x, gamma2d, beta2d, eps, out_dtype, tile_budget,
                      vmem_limit, tile_b=None):
    B, D = x.shape
    itemsize = jnp.dtype(out_dtype).itemsize
    if tile_b is None:
        tile_b = min(_round_up(B, 8), 1024)
        while tile_b > 8 and _per_lane_bytes(tile_b, itemsize) * _LANE > tile_budget:
            tile_b = max(8, _round_up(tile_b // 2, 8))
    tile_d = _pick_tile_d(tile_b, D, itemsize, tile_budget)
    nd = pl.cdiv(D, tile_d)
    nb = pl.cdiv(B, tile_b)

    # Pass 1: per-feature sum / sum-of-squares accumulated over batch blocks.
    x_sum, x_sq = pl.pallas_call(
        functools.partial(_bn_stats_kernel, batch=B, tile_b=tile_b),
        out_shape=(jax.ShapeDtypeStruct((1, D), jnp.float32),
                   jax.ShapeDtypeStruct((1, D), jnp.float32)),
        grid=(nd, nb),
        in_specs=[pl.BlockSpec((tile_b, tile_d), lambda j, i: (i, j))],
        out_specs=[pl.BlockSpec((1, tile_d), lambda j, i: (0, j)),
                   pl.BlockSpec((1, tile_d), lambda j, i: (0, j))],
        compiler_params=pltpu.CompilerParams(
            dimension_semantics=("parallel", "arbitrary"),
            vmem_limit_bytes=vmem_limit,
        ),
    )(x)

    # Tiny (1, D) arithmetic stays in plain JAX.
    inv_b = 1.0 / B
    mean = x_sum * inv_b
    var = jnp.maximum(x_sq * inv_b - mean * mean, 0.0)
    inv_std = jax.lax.rsqrt(var + float(eps))
    scale = gamma2d.astype(jnp.float32) * inv_std
    shift = beta2d.astype(jnp.float32) - mean * scale

    # Pass 2: normalize + affine.
    return pl.pallas_call(
        _bn_apply_kernel,
        out_shape=jax.ShapeDtypeStruct((B, D), out_dtype),
        grid=(nd, nb),
        in_specs=[
            pl.BlockSpec((tile_b, tile_d), lambda j, i: (i, j)),
            pl.BlockSpec((1, tile_d), lambda j, i: (0, j)),
            pl.BlockSpec((1, tile_d), lambda j, i: (0, j)),
        ],
        out_specs=pl.BlockSpec((tile_b, tile_d), lambda j, i: (i, j)),
        compiler_params=pltpu.CompilerParams(
            dimension_semantics=("parallel", "parallel"),
            vmem_limit_bytes=vmem_limit,
        ),
    )(x, scale, shift)


# ---------------------------------------------------------------------------
# Public wrapper (forward pass of CustomBatchNormManualModule).
# ---------------------------------------------------------------------------
def custom_batchnorm_forward(x, gamma, beta, eps=1e-5):
    """Pallas forward pass of CustomBatchNormManualModule.

    Args:
      x:     (B, D) array.
      gamma: (D,)   per-neuron scale.
      beta:  (D,)   per-neuron bias.
      eps:   stability constant.
    Returns:
      (B, D) batch-normalized output (same floating dtype as x).
    """
    assert x.ndim == 2, "expected (n_batch, n_neurons)"
    B, D = x.shape
    assert gamma.shape == (D,) and beta.shape == (D,), "Unexpected input dimensions"

    out_dtype = x.dtype if jnp.issubdtype(x.dtype, jnp.floating) else jnp.float32
    x = x.astype(out_dtype)
    gamma2d = gamma.reshape(1, D)
    beta2d = beta.reshape(1, D)

    tile_budget, vmem_limit = _vmem_budgets()
    itemsize = jnp.dtype(out_dtype).itemsize
    if _per_lane_bytes(B, itemsize) * _LANE <= tile_budget:
        return _forward_single_pass(x, gamma2d, beta2d, eps, out_dtype,
                                    tile_budget, vmem_limit)
    return _forward_two_pass(x, gamma2d, beta2d, eps, out_dtype,
                             tile_budget, vmem_limit)


def reference_batchnorm(x, gamma, beta, eps=1e-5):
    x = x.astype(jnp.float32)
    mean = jnp.mean(x, axis=0)
    var = jnp.var(x, axis=0)  # biased (ddof=0), matches unbiased=False
    x_norm = (x - mean) / jnp.sqrt(var + eps)
    return gamma * x_norm + beta


if __name__ == "__main__":
    eps = 1e-5
    key = jax.random.PRNGKey(0)

    # Module config: n_neurons = D, eps = 1e-5; gamma=ones, beta=zeros init.
    B, D = 8, 32
    x = jax.random.normal(key, (B, D), dtype=jnp.float32)
    gamma = jnp.ones((D,), dtype=jnp.float32)
    beta = jnp.zeros((D,), dtype=jnp.float32)
    out = jax.block_until_ready(custom_batchnorm_forward(x, gamma, beta, eps))
    ref = reference_batchnorm(x, gamma, beta, eps)
    assert out.shape == (B, D)
    assert jnp.allclose(out, ref, atol=1e-5, rtol=1e-5), "f32 mismatch vs reference"

    # Lane-dense, multi-tile bf16 path (>=2 feature tiles for v7x megacore).
    B2, D2 = 64, 512
    x2 = jax.random.normal(jax.random.PRNGKey(1), (B2, D2), dtype=jnp.bfloat16)
    g2 = jnp.ones((D2,), dtype=jnp.float32)
    b2 = jnp.zeros((D2,), dtype=jnp.float32)
    out2 = jax.block_until_ready(custom_batchnorm_forward(x2, g2, b2, eps))
    ref2 = reference_batchnorm(x2, g2, b2, eps)
    assert out2.shape == (B2, D2)
    assert jnp.allclose(out2.astype(jnp.float32), ref2, atol=3e-2, rtol=3e-2), \
        "bf16 mismatch vs reference"

    # Exercise the large-batch two-pass path at small scale by forcing a tiny
    # batch tile (covers boundary batch block and boundary feature block).
    B3, D3 = 20, 192
    x3 = jax.random.normal(jax.random.PRNGKey(2), (B3, D3), dtype=jnp.float32)
    g3 = jnp.full((D3,), 1.5, dtype=jnp.float32)
    b3 = jnp.full((D3,), -0.25, dtype=jnp.float32)
    tb, vl = _vmem_budgets()
    out3 = jax.block_until_ready(
        _forward_two_pass(x3, g3.reshape(1, D3), b3.reshape(1, D3), eps,
                          jnp.float32, tb, vl, tile_b=8))
    ref3 = reference_batchnorm(x3, g3, b3, eps)
    assert out3.shape == (B3, D3)
    assert jnp.allclose(out3, ref3, atol=1e-5, rtol=1e-5), \
        "two-pass mismatch vs reference"

    print("KERNEL_OK")
</pallas_src>

<mosaic_0001>
module attributes {stable_mosaic.version = 11 : i64} {
  func.func @_bn_single_pass_kernel(%arg0: i32, %arg1: memref<8x128xf32, #tpu.memory_space<vmem>>, %arg2: memref<1x128xf32, #tpu.memory_space<vmem>>, %arg3: memref<1x128xf32, #tpu.memory_space<vmem>>, %arg4: memref<8x128xf32, #tpu.memory_space<vmem>>) attributes {dimension_semantics = [#tpu.dimension_semantics<parallel>], iteration_bounds = array<i64: 1>, scalar_prefetch = 0 : i64, scratch_operands = 0 : i64, tpu.core_type = #tpu.core_type<tc>, window_params = [{transform_indices = @transform_0, window_bounds = array<i64: 8, 128>}, {transform_indices = @transform_1, window_bounds = array<i64: 1, 128>}, {transform_indices = @transform_2, window_bounds = array<i64: 1, 128>}, {transform_indices = @transform_3, window_bounds = array<i64: 8, 128>}]} {
    %c0 = arith.constant 0 : index
    %c0_0 = arith.constant 0 : index
    %0 = vector.load %arg1[%c0, %c0_0] : memref<8x128xf32, #tpu.memory_space<vmem>>, vector<8x128xf32>
    %cst = arith.constant dense<0.000000e+00> : vector<128xf32>
    %1 = vector.multi_reduction <add>, %0, %cst [0] : vector<8x128xf32> to vector<128xf32>
    %2 = vector.shape_cast %1 : vector<128xf32> to vector<1x128xf32>
    %3 = arith.mulf %0, %0 : vector<8x128xf32>
    %cst_1 = arith.constant dense<0.000000e+00> : vector<128xf32>
    %4 = vector.multi_reduction <add>, %3, %cst_1 [0] : vector<8x128xf32> to vector<128xf32>
    %5 = vector.shape_cast %4 : vector<128xf32> to vector<1x128xf32>
    %cst_2 = arith.constant 1.250000e-01 : f32
    %6 = vector.broadcast %cst_2 : f32 to vector<1x128xf32>
    %7 = arith.mulf %2, %6 : vector<1x128xf32>
    %cst_3 = arith.constant 1.250000e-01 : f32
    %8 = vector.broadcast %cst_3 : f32 to vector<1x128xf32>
    %9 = arith.mulf %5, %8 : vector<1x128xf32>
    %10 = arith.mulf %7, %7 : vector<1x128xf32>
    %11 = arith.subf %9, %10 : vector<1x128xf32>
    %cst_4 = arith.constant 0.000000e+00 : f32
    %12 = vector.broadcast %cst_4 : f32 to vector<1x128xf32>
    %13 = arith.maximumf %11, %12 : vector<1x128xf32>
    %cst_5 = arith.constant 9.99999974E-6 : f32
    %14 = vector.broadcast %cst_5 : f32 to vector<1x128xf32>
    %15 = arith.addf %13, %14 : vector<1x128xf32>
    %16 = math.rsqrt %15 : vector<1x128xf32>
    %c0_6 = arith.constant 0 : index
    %c0_7 = arith.constant 0 : index
    %17 = vector.load %arg2[%c0_6, %c0_7] : memref<1x128xf32, #tpu.memory_space<vmem>>, vector<1x128xf32>
    %18 = arith.mulf %17, %16 : vector<1x128xf32>
    %c0_8 = arith.constant 0 : index
    %c0_9 = arith.constant 0 : index
    %19 = vector.load %arg3[%c0_8, %c0_9] : memref<1x128xf32, #tpu.memory_space<vmem>>, vector<1x128xf32>
    %20 = arith.mulf %7, %18 : vector<1x128xf32>
    %21 = arith.subf %19, %20 : vector<1x128xf32>
    %22 = vector.broadcast %18 : vector<1x128xf32> to vector<8x128xf32>
    %23 = arith.mulf %0, %22 : vector<8x128xf32>
    %24 = vector.broadcast %21 : vector<1x128xf32> to vector<8x128xf32>
    %25 = arith.addf %23, %24 : vector<8x128xf32>
    %c0_10 = arith.constant 0 : index
    %c0_11 = arith.constant 0 : index
    %26 = vector.load %arg4[%c0_10, %c0_11] : memref<8x128xf32, #tpu.memory_space<vmem>>, vector<8x128xf32>
    tpu.vector_store %arg4[%c0_10, %c0_11], %25 {strides = array<i32>} : memref<8x128xf32, #tpu.memory_space<vmem>>, vector<8x128xf32>,
    return
  }
  func.func @transform_0(%arg0: i32) -> (i32, i32) {
    %c0_i32 = arith.constant 0 : i32
    %c0_i32_0 = arith.constant 0 : i32
    return %c0_i32, %arg0 : i32, i32
  }
  func.func @transform_1(%arg0: i32) -> (i32, i32) {
    %c0_i32 = arith.constant 0 : i32
    %c0_i32_0 = arith.constant 0 : i32
    return %c0_i32, %arg0 : i32, i32
  }
  func.func @transform_2(%arg0: i32) -> (i32, i32) {
    %c0_i32 = arith.constant 0 : i32
    %c0_i32_0 = arith.constant 0 : i32
    return %c0_i32, %arg0 : i32, i32
  }
  func.func @transform_3(%arg0: i32) -> (i32, i32) {
    %c0_i32 = arith.constant 0 : i32
    %c0_i32_0 = arith.constant 0 : i32
    return %c0_i32, %arg0 : i32, i32
  }
}

</mosaic_0001>

<bundles_post_ra>
// kernel: tpu_custom_call.1
= control target key start
LH: loop header
LB: loop body
LE: loop exit
PB: predicated region body
PF: predicated region fallthrough
CT: control target
= control target key end

     0   :  { %8 = vsyncpa [#allocation3], 0  ;;  %s187_s0 = inlined_call_operand.hbm [shape: f32[8,32], index: 0, kind: input, shape index: {}]   ;;  %s188_s1 = inlined_call_operand.vmem [shape: f32[1,32], index: 1, kind: input, shape index: {}]   ;;  %s189_s2 = inlined_call_operand.vmem [shape: f32[1,32], index: 2, kind: input, shape index: {}]   ;;  %s190_s3 = inlined_call_operand.hbm [shape: f32[8,32], index: 3, kind: output, shape index: {}]  }
   0x1   :  { %9 = vsyncpa [#allocation4], 0  ;;  %s135_s12 = smov [#allocation2]   ;;  %s87_s16 = scalar_lea.hbm %s187_s0, 128 }
   0x2   :  { %s16_s13 = sshll.u32 %s135_s12, 4  ;;  %p88_p0 = scmp.ne.s32.totalorder %s187_s0, %s87_s16  ;;  %s17_s13 = int_to_ptr.vmem [resolvable:$true] %s16_s13 }
   0x3   :  { %p91_p1 = scmp.lt.u32.totalorder %s87_s16, %s187_s0 }
   0x5   :  { %p93_p2 = pnand %p91_p1, %p88_p0 }
   0x7   :  { %96 = shalt.err (!%p93_p2)
}
   0x8   :  { %s97_s21 = scalar_lea.vmem %s17_s13, 128  ;;  %p102_p4 = scmp.lt.s32.totalorder %s17_s13, %s17_s13 }
   0x9   :  { %p98_p3 = scmp.ne.s32.totalorder %s17_s13, %s97_s21  ;;  %p103_p5 = scmp.lt.s32.totalorder %s97_s21, %s97_s21 }
   0xb   :  { %p104_p6 = por %p103_p5, %p102_p4 }
   0xd   :  { %p105_p7 = pnand %p104_p6, %p98_p3 }
   0xf   :  { %108 = shalt.err (!%p105_p7)
}
  0x10   :  { %19 = dma.hbm_to_vmem [thread:$0]  %s187_s0, 128, %s17_s13, [#allocation3]  }
  0x11   :  { %131 = dma.done.wait [#allocation3], 128  }
  0x12   :  { %132 = vsyncadd [#allocation3], 4294967168  ;;  %v27_v0 = vld [vmem:[#allocation2] sm:$0xff]  ;;  %v54_v20 = vlaneseq  ;;  %s136_s27 = smov [#allocation5]  }
  0x13   :  { %v28_v1 = vrot.slane %v27_v0, 4  ;;  %v34_v2 = vmul.f32 %v27_v0, %v27_v0  ;;  %v48_v22 = vld [vmem:[%s188_s1] sm:$0x1]  ;;  %s74_s28 = sshll.u32 %s136_s27, 4  ;;  %s75_s28 = int_to_ptr.vmem [resolvable:$true] %s74_s28 }
  0x14   :  { %v55_v21 = vshrl.u32 %v54_v20, 7  ;;  %v50_v26 = vld [vmem:[%s189_s2] sm:$0x1]  ;;  %s109_s29 = scalar_lea.vmem %s75_s28, 128  ;;  %p114_p9 = scmp.lt.s32.totalorder %s75_s28, %s75_s28 }
  0x15   :  { %v29_v3 = vadd.f32 %v28_v1, %v27_v0  ;;  %v35_v4 = vrot.slane %v34_v2, 4  ;;  %p110_p8 = scmp.ne.s32.totalorder %s75_s28, %s109_s29  ;;  %p115_p10 = scmp.lt.s32.totalorder %s109_s29, %s109_s29 }
  0x16   :  { %v56_v23 = vsub.s32 0, %v55_v21 }
  0x17   :  { %v30_v5 = vrot.slane %v29_v3, 2  ;;  %v36_v6 = vadd.f32 %v35_v4, %v34_v2  ;;  %p116_p11 = por %p115_p10, %p114_p9 }
  0x19   :  { %v31_v7 = vadd.f32 %v30_v5, %v29_v3  ;;  %v37_v8 = vrot.slane %v36_v6, 2  ;;  %p117_p12 = pnand %p116_p11, %p110_p8 }
  0x1b   :  { %v32_v9 = vrot.slane %v31_v7, 1  ;;  %v38_v10 = vadd.f32 %v37_v8, %v36_v6 }
  0x1d   :  { %v33_v11 = vadd.f32 %v32_v9, %v31_v7  ;;  %v39_v12 = vrot.slane %v38_v10, 1 }
  0x1f   :  { %v40_v13 = vadd.f32 %v39_v12, %v38_v10  ;;  %v41_v14 = vmul.f32 0.125, %v33_v11 }
  0x21   :  { %v42_v15 = vmul.f32 0.125, %v40_v13  ;;  %v43_v16 = vmul.f32 %v41_v14, %v41_v14 }
  0x23   :  { %v44_v17 = vsub.f32 %v42_v15, %v43_v16 }
  0x25   :  { %v45_v18 = vmax.f32 %v44_v17, 0.0 }
  0x27   :  { %v46_v19 = vadd.f32 1e-05, %v45_v18 }
  0x29   :  { %85 = vrsqrt.f32 %v46_v19 }
  0x33   :  { %v86_v24 = vpop.eup %85 }
  0x34   :  { %v49_v25 = vmul.f32 %v86_v24, %v48_v22 }
  0x36   :  { %v51_v27 = vmul.f32 %v49_v25, %v41_v14  ;;  %v57_v28 = vrot.slane %v49_v25, %v56_v23 }
  0x38   :  { %v52_v29 = vsub.f32 %v50_v26, %v51_v27  ;;  %v59_v30 = vmul.f32 %v57_v28, %v27_v0 }
  0x3a   :  { %v64_v31 = vrot.slane %v52_v29, %v56_v23 }
  0x3c   :  { %v66_v32 = vadd.f32 %v64_v31, %v59_v30 }
  0x3e   :  { %67 = vst [vmem:[#allocation5] sm:$0xff] %v66_v32 }
  0x3f   :  { %120 = shalt.err (!%p117_p12)
}
  0x40   :  { %s121_s2 = scalar_lea.hbm %s190_s3, 128 }
  0x41   :  { %p122_p13 = scmp.ne.s32.totalorder %s190_s3, %s121_s2  ;;  %p125_p0 = scmp.lt.u32.totalorder %s121_s2, %s190_s3 }
  0x43   :  { %p127_p1 = pnand %p125_p0, %p122_p13 }
  0x45   :  { %130 = shalt.err (!%p127_p1)
}
  0x46   :  { %77 = dma.vmem_to_hbm [thread:$0]  %s75_s28, 128, %s190_s3, [#allocation4]  }
  0x47   :  { %133 = dma.done.wait [#allocation4], 128  }
  0x48   :  { %134 = vsyncadd [#allocation4], 4294967168 }
  0x49   :  { %81 = vsyncpa [#allocation3], 1 }
  0x4a   :  { %82 = vsyncpa [#allocation4], 1 }

</bundles_post_ra>
